<compile_context>
chip_gen: v7x
topology: tpu7x:2x2x1
jax: 0.10.0
libtpu: 0.0.40
codegen_flags: <defaults>
</compile_context>

<pallas_src>
import jax
import jax.numpy as jnp
from jax import lax
from jax.experimental import pallas as pl
from jax.experimental.pallas import tpu as pltpu

C_IN, C_OUT = 3, 64
KH = KW = 3
SH = SW = 2
POOL_S = 2                       # MaxPool2d((1,1),(2,2)) stride
KP = 32                          # padded contraction dim: 27 taps + 1 bias + 4 zero
LRN_SIZE = 5
LRN_ALPHA = 0.0005
LRN_BETA = 0.75                  # implemented exactly as the -(1/2 + 1/4) power
LRN_K = 2.0


def _vggm_kernel(p_ref, w_ref, band_ref, o_ref):
    # Conv2d(3->64,3x3,s=2) + bias as one lane-dense MXU matmul: (64,32)@(32,tm).
    y = jnp.dot(w_ref[...], p_ref[...], preferred_element_type=jnp.float32)
    y = jnp.maximum(y, 0.0)                          # ReLU
    # SpatialCrossMapLRN(5, 5e-4, 0.75, 2), ACROSS_CHANNELS:
    #   div = (avgpool_k5(y^2) * alpha + k) ** 0.75 ; out = y / div
    # AvgPool3d counts padded zeros (count_include_pad), so the denominator is
    # always LRN_SIZE.  Channel-window sum done as a banded (64,64) matmul.
    y2 = y * y
    win = jnp.dot(band_ref[...], y2, preferred_element_type=jnp.float32)
    base = win * (LRN_ALPHA / LRN_SIZE) + LRN_K      # >= k = 2 > 0
    r = lax.rsqrt(base)                              # base**-0.5 (EUP)
    o_ref[...] = y * (r * jnp.sqrt(r))               # y * base**-0.75


def vggm_forward(x_nchw, w_oihw, bias, *, tm=2048):
    N, C, H, W = x_nchw.shape
    assert C == C_IN
    x = jnp.transpose(x_nchw, (0, 2, 3, 1)).astype(jnp.float32)   # NHWC

    # Conv output size; MaxPool((1,1), stride 2, ceil) keeps even indices only.
    Ho = (H - KH) // SH + 1
    Wo = (W - KW) // SW + 1
    Hp = (Ho + 1) // 2
    Wp = (Wo + 1) // 2
    M = N * Hp * Wp

    # Output-pixel tile width (lanes); multiple of 128, no over-padding of
    # tiny inputs.  TODO(synk): sweep 1024-4096 per chip at production shapes.
    tm = max(128, min(tm, pl.cdiv(M, 128) * 128))
    Mp = pl.cdiv(M, tm) * tm

    # Fused im2col + maxpool: only kept pixels (effective input stride 4).
    sh, sw = SH * POOL_S, SW * POOL_S
    cols = []
    for i in range(KH):
        for j in range(KW):
            cols.append(x[:, i:i + sh * (Hp - 1) + 1:sh,
                            j:j + sw * (Wp - 1) + 1:sw, :])
    pat = jnp.stack(cols, axis=0)                    # (9, N, Hp, Wp, 3)
    pat = jnp.transpose(pat, (0, 4, 1, 2, 3))        # (kh*kw, cin, N, Hp, Wp)
    pat = pat.reshape(KH * KW * C_IN, M)             # (27, M), rows = (kh,kw,cin)
    patches = jnp.concatenate(
        [pat,
         jnp.ones((1, M), jnp.float32),              # bias row
         jnp.zeros((KP - KH * KW * C_IN - 1, M), jnp.float32)], axis=0)
    patches = jnp.pad(patches, ((0, 0), (0, Mp - M)))            # (32, Mp)

    # Weight (Cout,Cin,kh,kw) -> (Cout,kh,kw,cin) -> (64,27); append bias col.
    w_t = jnp.transpose(w_oihw, (0, 2, 3, 1)).reshape(C_OUT, KH * KW * C_IN)
    w_mat = jnp.concatenate(
        [w_t.astype(jnp.float32),
         bias.reshape(C_OUT, 1).astype(jnp.float32),
         jnp.zeros((C_OUT, KP - KH * KW * C_IN - 1), jnp.float32)], axis=1)

    # Banded 64x64 matrix: 1 where |ci - cj| <= 2 (channel window of 5).
    ch = jnp.arange(C_OUT)
    band = (jnp.abs(ch[:, None] - ch[None, :]) <= (LRN_SIZE - 1) // 2)
    band = band.astype(jnp.float32)

    cost = pl.CostEstimate(
        flops=2 * Mp * C_OUT * (KP + C_OUT) + 6 * Mp * C_OUT,
        transcendentals=2 * Mp * C_OUT,
        bytes_accessed=4 * Mp * (KP + C_OUT) + 4 * C_OUT * (KP + C_OUT),
    )

    out = pl.pallas_call(
        _vggm_kernel,
        out_shape=jax.ShapeDtypeStruct((C_OUT, Mp), jnp.float32),
        grid=(Mp // tm,),
        in_specs=[
            pl.BlockSpec((KP, tm), lambda i: (0, i)),         # lane-dense LHS
            pl.BlockSpec((C_OUT, KP), lambda i: (0, 0)),      # weights (resident)
            pl.BlockSpec((C_OUT, C_OUT), lambda i: (0, 0)),   # LRN band (resident)
        ],
        out_specs=pl.BlockSpec((C_OUT, tm), lambda i: (0, i)),  # lane-dense output
        compiler_params=pltpu.CompilerParams(
            dimension_semantics=("parallel",)),
        cost_estimate=cost,
    )(patches, w_mat, band)

    y = out[:, :M].reshape(C_OUT, N, Hp, Wp)
    return jnp.transpose(y, (1, 0, 2, 3))            # back to NCHW


def _reference(x_nchw, w_oihw, bias):
    # Pure-JAX reference of the same forward pass (NCHW).
    y = lax.conv_general_dilated(
        x_nchw.astype(jnp.float32), w_oihw.astype(jnp.float32),
        window_strides=(SH, SW), padding='VALID',
        dimension_numbers=('NCHW', 'OIHW', 'NCHW'))
    y = y + bias.reshape(1, C_OUT, 1, 1)
    y = jnp.maximum(y, 0.0)
    y2 = jnp.pad(y * y, ((0, 0), (2, 2), (0, 0), (0, 0)))
    win = sum(y2[:, i:i + C_OUT] for i in range(LRN_SIZE)) / LRN_SIZE
    div = (win * LRN_ALPHA + LRN_K) ** LRN_BETA
    y = y / div
    # MaxPool2d((1,1), stride 2, ceil_mode=True) == keep even indices.
    return y[:, :, ::2, ::2]


if __name__ == "__main__":
    key = jax.random.PRNGKey(0)
    kx, kw, kb = jax.random.split(key, 3)

    # Small shapes consistent with the module: N=2, Cin=3 (fixed by conv), 16x16.
    x = jax.random.normal(kx, (2, C_IN, 16, 16), dtype=jnp.float32)
    w = jax.random.normal(kw, (C_OUT, C_IN, KH, KW), dtype=jnp.float32) * 0.1
    b = jax.random.normal(kb, (C_OUT,), dtype=jnp.float32) * 0.1

    out = jax.block_until_ready(vggm_forward(x, w, b))
    ref = jax.block_until_ready(_reference(x, w, b))

    assert out.shape == ref.shape, (out.shape, ref.shape)
    assert jnp.allclose(out, ref, rtol=1e-3, atol=1e-4), \
        float(jnp.max(jnp.abs(out - ref)))
    print("KERNEL_OK")
</pallas_src>

<mosaic_0001>
module attributes {stable_mosaic.version = 11 : i64} {
  func.func @_vggm_kernel(%arg0: i32, %arg1: memref<32x128xf32, #tpu.memory_space<vmem>>, %arg2: memref<64x32xf32, #tpu.memory_space<vmem>>, %arg3: memref<64x64xf32, #tpu.memory_space<vmem>>, %arg4: memref<64x128xf32, #tpu.memory_space<vmem>>) attributes {dimension_semantics = [#tpu.dimension_semantics<parallel>], iteration_bounds = array<i64: 1>, scalar_prefetch = 0 : i64, scratch_operands = 0 : i64, tpu.core_type = #tpu.core_type<tc>, window_params = [{transform_indices = @transform_0, window_bounds = array<i64: 32, 128>}, {pipeline_mode = #tpu.pipeline_mode<synchronous>, transform_indices = @transform_1, window_bounds = array<i64: 64, 32>}, {pipeline_mode = #tpu.pipeline_mode<synchronous>, transform_indices = @transform_2, window_bounds = array<i64: 64, 64>}, {transform_indices = @transform_3, window_bounds = array<i64: 64, 128>}]} {
    %c0 = arith.constant 0 : index
    %c0_0 = arith.constant 0 : index
    %0 = vector.load %arg2[%c0, %c0_0] : memref<64x32xf32, #tpu.memory_space<vmem>>, vector<64x32xf32>
    %c0_1 = arith.constant 0 : index
    %c0_2 = arith.constant 0 : index
    %1 = vector.load %arg1[%c0_1, %c0_2] : memref<32x128xf32, #tpu.memory_space<vmem>>, vector<32x128xf32>
    %cst = arith.constant dense<0.000000e+00> : vector<64x128xf32>
    %2 = tpu.matmul %0, %1, %cst {dimension_numbers = #tpu.dot_dimension_numbers<[1], [0], [0], [1], [0, 0, 1, 1], [], []>} : vector<64x32xf32>, vector<32x128xf32>, vector<64x128xf32> -> vector<64x128xf32>
    %cst_3 = arith.constant 0.000000e+00 : f32
    %3 = vector.broadcast %cst_3 : f32 to vector<64x128xf32>
    %4 = arith.maximumf %2, %3 : vector<64x128xf32>
    %5 = arith.mulf %4, %4 : vector<64x128xf32>
    %c0_4 = arith.constant 0 : index
    %c0_5 = arith.constant 0 : index
    %6 = vector.load %arg3[%c0_4, %c0_5] : memref<64x64xf32, #tpu.memory_space<vmem>>, vector<64x64xf32>
    %cst_6 = arith.constant dense<0.000000e+00> : vector<64x128xf32>
    %7 = tpu.matmul %6, %5, %cst_6 {dimension_numbers = #tpu.dot_dimension_numbers<[1], [0], [0], [1], [0, 0, 1, 1], [], []>} : vector<64x64xf32>, vector<64x128xf32>, vector<64x128xf32> -> vector<64x128xf32>
    %cst_7 = arith.constant 9.99999974E-5 : f32
    %8 = vector.broadcast %cst_7 : f32 to vector<64x128xf32>
    %9 = arith.mulf %7, %8 : vector<64x128xf32>
    %cst_8 = arith.constant 2.000000e+00 : f32
    %10 = vector.broadcast %cst_8 : f32 to vector<64x128xf32>
    %11 = arith.addf %9, %10 : vector<64x128xf32>
    %12 = math.rsqrt %11 : vector<64x128xf32>
    %13 = math.sqrt %12 : vector<64x128xf32>
    %14 = arith.mulf %12, %13 : vector<64x128xf32>
    %15 = arith.mulf %4, %14 : vector<64x128xf32>
    %c0_9 = arith.constant 0 : index
    %c0_10 = arith.constant 0 : index
    %16 = vector.load %arg4[%c0_9, %c0_10] : memref<64x128xf32, #tpu.memory_space<vmem>>, vector<64x128xf32>
    tpu.vector_store %arg4[%c0_9, %c0_10], %15 {strides = array<i32>} : memref<64x128xf32, #tpu.memory_space<vmem>>, vector<64x128xf32>,
    return
  }
  func.func @transform_0(%arg0: i32) -> (i32, i32) {
    %c0_i32 = arith.constant 0 : i32
    %c0_i32_0 = arith.constant 0 : i32
    return %c0_i32, %arg0 : i32, i32
  }
  func.func @transform_1(%arg0: i32) -> (i32, i32) {
    %c0_i32 = arith.constant 0 : i32
    %c0_i32_0 = arith.constant 0 : i32
    %c0_i32_1 = arith.constant 0 : i32
    return %c0_i32, %c0_i32_0 : i32, i32
  }
  func.func @transform_2(%arg0: i32) -> (i32, i32) {
    %c0_i32 = arith.constant 0 : i32
    %c0_i32_0 = arith.constant 0 : i32
    %c0_i32_1 = arith.constant 0 : i32
    return %c0_i32, %c0_i32_0 : i32, i32
  }
  func.func @transform_3(%arg0: i32) -> (i32, i32) {
    %c0_i32 = arith.constant 0 : i32
    %c0_i32_0 = arith.constant 0 : i32
    return %c0_i32, %arg0 : i32, i32
  }
}

</mosaic_0001>

<bundles_post_ra>
// kernel: tpu_custom_call.1
= control target key start
LH: loop header
LB: loop body
LE: loop exit
PB: predicated region body
PF: predicated region fallthrough
CT: control target
= control target key end

     0   :  { %vm27_vm0 = vcmask 261120   ;;  %s810_s0 = inlined_call_operand.vmem [shape: f32[32,128], index: 0, kind: input, shape index: {}]   ;;  %s811_s1 = inlined_call_operand.vmem [shape: f32[64,32], index: 1, kind: input, shape index: {}]   ;;  %s812_s2 = inlined_call_operand.vmem [shape: f32[64,64], index: 2, kind: input, shape index: {}]   ;;  %s813_s3 = inlined_call_operand.hbm [shape: f32[64,128], index: 3, kind: output, shape index: {}]  }
   0x1   :  { %v23_v0 = vld [vmem:[%s810_s0] sm:$0xff]  ;;  %v24_v1 = vld [vmem:[%s810_s0 + $0x8] sm:$0xff]  ;;  %v25_v2 = vld [vmem:[%s810_s0 + $0x10] sm:$0xff] }
   0x2   :  { %v523_v3 = vpack.c.bf16 %v24_v1, %v23_v0  ;;  %v26_v4 = vld [vmem:[%s810_s0 + $0x18] sm:$0xff]  ;;  %v15_v5 = vld [vmem:[%s811_s1] sm:$0xff] }
   0x3   :  { %v527_v6 = vpack.c.bf16 %v26_v4, %v25_v2  ;;  %483 = vmatprep.mubr.msk.f32.mxu0 %vm27_vm0, %v15_v5 }
   0x4   :  { %524 = vmatprep.subr.bf16.mxu0 %v523_v3 }
   0x5   :  { %526 = vmatpush3.bf16.msra.mxu0 %v523_v3 }
   0x6   :  { %8 = vsyncpa [#allocation3], 0  ;;  %528 = vmatprep.subr.bf16.mxu0 %v527_v6  ;;  %v16_v7 = vld [vmem:[%s811_s1 + $0x8] sm:$0xff]  ;;  %v17_v8 = vld [vmem:[%s811_s1 + $0x10] sm:$0xff]  ;;  %vm181_vm1 = vcmask 523264  }
   0x7   :  { %v18_v9 = vld [vmem:[%s811_s1 + $0x18] sm:$0xff]  ;;  %v19_v10 = vld [vmem:[%s811_s1 + $0x20] sm:$0xff]  ;;  %v20_v11 = vld [vmem:[%s811_s1 + $0x28] sm:$0xff] }
   0x8   :  { %v21_v12 = vld [vmem:[%s811_s1 + $0x30] sm:$0xff]  ;;  %v22_v13 = vld [vmem:[%s811_s1 + $0x38] sm:$0xff]  ;;  %v173_v14 = vld [vmem:[%s812_s2] sm:$0xff] }
   0x9   :  { %530 = vmatpush3.bf16.msra.mxu0 %v527_v6  ;;  %v175_v15 = vld [vmem:[%s812_s2 + $0x10] sm:$0xff]  ;;  %v174_v44 = vld [vmem:[%s812_s2 + $0x8] sm:$0xff]  ;;  %v176_v45 = vld [vmem:[%s812_s2 + $0x18] sm:$0xff] }
   0xa   :  { %514 = vmatprep.mubr.msk.f32.mxu1 %vm181_vm1, %v175_v15  ;;  %v177_v46 = vld [vmem:[%s812_s2 + $0x20] sm:$0xff]  ;;  %v178_v47 = vld [vmem:[%s812_s2 + $0x28] sm:$0xff]  ;;  %v179_v48 = vld [vmem:[%s812_s2 + $0x30] sm:$0xff] }
   0xb   :  { %v180_v49 = vld [vmem:[%s812_s2 + $0x38] sm:$0xff]  ;;  %s614_s2 = smov [#allocation2]  }
   0xc   :  { %484 = vmatmul.mubr.msk.f32.vlgmr.msra.gmra.mrb[0].mxu0 %vm27_vm0, %v16_v7  ;;  %s420_s23 = sshll.u32 %s614_s2, 4  ;;  %s421_s23 = int_to_ptr.vmem [resolvable:$true] %s420_s23 }
   0xd   :  { %486 = vmatprep.mubr.msk.f32.mxu0 %vm27_vm0, %v17_v8  ;;  %s590_s24 = scalar_lea.vmem %s421_s23, 1024  ;;  %p595_p1 = scmp.lt.s32.totalorder %s421_s23, %s421_s23 }
   0xe   :  { %p591_p0 = scmp.ne.s32.totalorder %s421_s23, %s590_s24  ;;  %p596_p2 = scmp.lt.s32.totalorder %s590_s24, %s590_s24 }
  0x10   :  { %487 = vmatmul.mubr.msk.f32.gmra.mrb[2].mxu0 %vm27_vm0, %v18_v9  ;;  %p597_p3 = por %p596_p2, %p595_p1 }
  0x11   :  { %489 = vmatprep.mubr.msk.f32.mxu0 %vm27_vm0, %v19_v10 }
  0x12   :  { %p598_p4 = pnand %p597_p3, %p591_p0 }
  0x14   :  { %490 = vmatmul.mubr.msk.f32.gmra.mrb[4].mxu0 %vm27_vm0, %v20_v11 }
  0x15   :  { %492 = vmatprep.mubr.msk.f32.mxu0 %vm27_vm0, %v21_v12 }
  0x18   :  { %493 = vmatmul.mubr.msk.f32.gmra.mrb[6].mxu0 %vm27_vm0, %v22_v13 }
  0x19   :  { %511 = vmatprep.mubr.msk.f32.mxu0 %vm181_vm1, %v173_v14 }
  0xdf   :  { %v485_v16 = vpop.f32.mrb[0].mxu0 }
  0xe0   :  { %v689_v17 = vmax.f32 %v485_v16, 0.0  ;;  %v118_v18 = vpop.f32.mrb[1].mxu0 }
  0xe1   :  { %v691_v19 = vmax.f32 %v118_v18, 0.0 }
  0xe2   :  { %v166_v20 = vmul.f32 %v689_v17, %v689_v17 }
  0xe3   :  { %v165_v21 = vmul.f32 %v691_v19, %v691_v19  ;;  %v488_v22 = vpop.f32.mrb[2].mxu0 }
  0xe4   :  { %v697_v23 = vmax.f32 %v488_v22, 0.0  ;;  %v128_v24 = vpop.f32.mrb[3].mxu0 }
  0xe5   :  { %v531_v25 = vpack.c.bf16 %v166_v20, %v165_v21  ;;  %v699_v26 = vmax.f32 %v128_v24, 0.0 }
  0xe6   :  { %v168_v27 = vmul.f32 %v697_v23, %v697_v23 }
  0xe7   :  { %v167_v28 = vmul.f32 %v699_v26, %v699_v26  ;;  %v491_v29 = vpop.f32.mrb[4].mxu0  ;;  %532 = vmatprep.subr.bf16.mxu0 %v531_v25  ;;  %547 = vmatprep.subr.bf16.mxu1 %v531_v25 }
  0xe8   :  { %v705_v30 = vmax.f32 %v491_v29, 0.0  ;;  %v138_v31 = vpop.f32.mrb[5].mxu0  ;;  %534 = vmatpush3.bf16.msra.mxu0 %v531_v25  ;;  %551 = vmatpush3.bf16.msra.mxu1 %v531_v25 }
  0xe9   :  { %v535_v32 = vpack.c.bf16 %v168_v27, %v167_v28  ;;  %v707_v33 = vmax.f32 %v138_v31, 0.0 }
  0xea   :  { %v170_v34 = vmul.f32 %v705_v30, %v705_v30 }
  0xeb   :  { %v169_v35 = vmul.f32 %v707_v33, %v707_v33  ;;  %v494_v36 = vpop.f32.mrb[6].mxu0  ;;  %536 = vmatprep.subr.bf16.mxu0 %v535_v32  ;;  %548 = vmatprep.subr.bf16.mxu1 %v535_v32 }
  0xec   :  { %v713_v37 = vmax.f32 %v494_v36, 0.0  ;;  %v148_v38 = vpop.f32.mrb[7].mxu0  ;;  %538 = vmatpush3.bf16.msra.mxu0 %v535_v32  ;;  %552 = vmatpush3.bf16.msra.mxu1 %v535_v32 }
  0xed   :  { %v539_v39 = vpack.c.bf16 %v170_v34, %v169_v35  ;;  %v715_v40 = vmax.f32 %v148_v38, 0.0 }
  0xee   :  { %v172_v41 = vmul.f32 %v713_v37, %v713_v37 }
  0xef   :  { %v171_v42 = vmul.f32 %v715_v40, %v715_v40  ;;  %540 = vmatprep.subr.bf16.mxu0 %v539_v39  ;;  %549 = vmatprep.subr.bf16.mxu1 %v539_v39 }
  0xf0   :  { %542 = vmatpush3.bf16.msra.mxu0 %v539_v39  ;;  %553 = vmatpush3.bf16.msra.mxu1 %v539_v39 }
  0xf1   :  { %v543_v43 = vpack.c.bf16 %v172_v41, %v171_v42 }
  0xf3   :  { %544 = vmatprep.subr.bf16.mxu0 %v543_v43  ;;  %550 = vmatprep.subr.bf16.mxu1 %v543_v43 }
  0xf4   :  { %546 = vmatpush3.bf16.msra.mxu0 %v543_v43  ;;  %554 = vmatpush3.bf16.msra.mxu1 %v543_v43 }
  0xf7   :  { %512 = vmatmul.mubr.msk.f32.vlgmr.msra.gmra.mrb[8].mxu0 %vm181_vm1, %v174_v44  ;;  %515 = vmatmul.mubr.msk.f32.vlgmr.msra.gmra.mrb[0].mxu1 %vm181_vm1, %v176_v45 }
  0xf8   :  { %517 = vmatprep.mubr.msk.f32.mxu1 %vm181_vm1, %v177_v46 }
  0xfb   :  { %518 = vmatmul.mubr.msk.f32.gmra.mrb[2].mxu1 %vm181_vm1, %v178_v47 }
  0xfc   :  { %520 = vmatprep.mubr.msk.f32.mxu1 %vm181_vm1, %v179_v48 }
  0xff   :  { %521 = vmatmul.mubr.msk.f32.gmra.mrb[4].mxu1 %vm181_vm1, %v180_v49 }
 0x1ca   :  { %v513_v50 = vpop.f32.mrb[8].mxu0  ;;  %v516_v51 = vpop.f32.mrb[0].mxu1 }
 0x1cb   :  { %v312_v52 = vmul.f32 0.0001, %v513_v50  ;;  %v314_v53 = vmul.f32 0.0001, %v516_v51  ;;  %v272_v54 = vpop.f32.mrb[9].mxu0  ;;  %v282_v55 = vpop.f32.mrb[1].mxu1 }
 0x1cc   :  { %v311_v56 = vmul.f32 0.0001, %v272_v54  ;;  %v313_v57 = vmul.f32 0.0001, %v282_v55 }
 0x1cd   :  { %v320_v58 = vadd.f32 2.0, %v312_v52  ;;  %v322_v59 = vadd.f32 2.0, %v314_v53 }
 0x1ce   :  { %v319_v60 = vadd.f32 2.0, %v311_v56  ;;  %v321_v61 = vadd.f32 2.0, %v313_v57  ;;  %v519_v62 = vpop.f32.mrb[2].mxu1 }
 0x1cf   :  { %558 = vrsqrt.f32 %v320_v58  ;;  %v316_v63 = vmul.f32 0.0001, %v519_v62  ;;  %v292_v0 = vpop.f32.mrb[3].mxu1 }
 0x1d0   :  { %560 = vrsqrt.f32 %v322_v59  ;;  %v315_v1 = vmul.f32 0.0001, %v292_v0 }
 0x1d1   :  { %562 = vrsqrt.f32 %v319_v60  ;;  %v324_v2 = vadd.f32 2.0, %v316_v63 }
 0x1d2   :  { %564 = vrsqrt.f32 %v321_v61  ;;  %v323_v3 = vadd.f32 2.0, %v315_v1  ;;  %v522_v4 = vpop.f32.mrb[4].mxu1 }
 0x1d3   :  { %566 = vrsqrt.f32 %v324_v2  ;;  %v318_v5 = vmul.f32 0.0001, %v522_v4  ;;  %v302_v6 = vpop.f32.mrb[5].mxu1 }
 0x1d4   :  { %568 = vrsqrt.f32 %v323_v3  ;;  %v317_v7 = vmul.f32 0.0001, %v302_v6 }
 0x1d5   :  { %v326_v8 = vadd.f32 2.0, %v318_v5 }
 0x1d6   :  { %v325_v9 = vadd.f32 2.0, %v317_v7 }
 0x1d7   :  { %570 = vrsqrt.f32 %v326_v8 }
 0x1d8   :  { %572 = vrsqrt.f32 %v325_v9 }
 0x1d9   :  { %v559_v10 = vpop.eup %558 }
 0x1da   :  { %v561_v11 = vpop.eup %560  ;;  %574 = vrsqrt.f32 %v559_v10  ;;  %vm344_vm2 = vcmp.eq.f32.partialorder %v559_v10, inf  ;;  %vm346_vm3 = vcmp.eq.f32.partialorder %v559_v10, 0.0  ;;  %v347_v20 = vand.u32 2147483648, %v559_v10 }
 0x1db   :  { %v563_v12 = vpop.eup %562  ;;  %576 = vrsqrt.f32 %v561_v11  ;;  %vm358_vm4 = vcmp.eq.f32.partialorder %v561_v11, inf  ;;  %vm360_vm6 = vcmp.eq.f32.partialorder %v561_v11, 0.0  ;;  %v361_v21 = vand.u32 2147483648, %v561_v11 }
 0x1dc   :  { %v565_v13 = vpop.eup %564  ;;  %578 = vrsqrt.f32 %v563_v12  ;;  %vm337_vm5 = vcmp.eq.f32.partialorder %v563_v12, inf  ;;  %vm339_vm7 = vcmp.eq.f32.partialorder %v563_v12, 0.0  ;;  %v340_v24 = vand.u32 2147483648, %v563_v12 }
 0x1dd   :  { %v567_v14 = vpop.eup %566  ;;  %580 = vrsqrt.f32 %v565_v13  ;;  %vm351_vm8 = vcmp.eq.f32.partialorder %v565_v13, inf  ;;  %vm353_vm9 = vcmp.eq.f32.partialorder %v565_v13, 0.0  ;;  %v354_v28 = vand.u32 2147483648, %v565_v13 }
 0x1de   :  { %v745_v15 = vpop.eup %568  ;;  %582 = vrsqrt.f32 %v567_v14  ;;  %vm372_vm10 = vcmp.eq.f32.partialorder %v567_v14, inf  ;;  %vm374_vm11 = vcmp.eq.f32.partialorder %v567_v14, 0.0  ;;  %v375_v32 = vand.u32 2147483648, %v567_v14 }
 0x1df   :  { %584 = vrsqrt.f32 %v745_v15  ;;  %vm365_vm12 = vcmp.eq.f32.partialorder %v745_v15, inf  ;;  %vm367_vm13 = vcmp.eq.f32.partialorder %v745_v15, 0.0  ;;  %v368_v38 = vand.u32 2147483648, %v745_v15 }
 0x1e1   :  { %v748_v16 = vpop.eup %570 }
 0x1e2   :  { %v750_v18 = vpop.eup %572  ;;  %586 = vrsqrt.f32 %v748_v16  ;;  %vm386_vm14 = vcmp.eq.f32.partialorder %v748_v16, inf  ;;  %vm388_vm15 = vcmp.eq.f32.partialorder %v748_v16, 0.0  ;;  %v389_v3 = vand.u32 2147483648, %v748_v16 }
 0x1e3   :  { %588 = vrsqrt.f32 %v750_v18  ;;  %vm379_vm0 = vcmp.eq.f32.partialorder %v750_v18, inf  ;;  %vm381_vm1 = vcmp.eq.f32.partialorder %v750_v18, 0.0 }
 0x1e4   :  { %v575_v22 = vpop.eup %574 }
 0x1e5   :  { %v577_v25 = vpop.eup %576  ;;  %v343_v27 = vmul.f32 %v575_v22, %v559_v10 }
 0x1e6   :  { %v579_v29 = vpop.eup %578  ;;  %v357_v31 = vmul.f32 %v577_v25, %v561_v11 }
 0x1e7   :  { %v581_v34 = vpop.eup %580  ;;  %v336_v35 = vmul.f32 %v579_v29, %v563_v12  ;;  %v345_v36 = vsel %vm344_vm2, %v559_v10, %v343_v27 }
 0x1e8   :  { %v583_v39 = vpop.eup %582  ;;  %v348_v41 = vsel %vm346_vm3, %v347_v20, %v345_v36  ;;  %v350_v42 = vmul.f32 %v581_v34, %v565_v13  ;;  %v359_v43 = vsel %vm358_vm4, %v561_v11, %v357_v31 }
 0x1e9   :  { %v585_v44 = vpop.eup %584  ;;  %v338_v45 = vsel %vm337_vm5, %v563_v12, %v336_v35  ;;  %v362_v46 = vsel %vm360_vm6, %v361_v21, %v359_v43  ;;  %v371_v47 = vmul.f32 %v583_v39, %v567_v14  ;;  %v392_v48 = vmul.f32 %v559_v10, %v348_v41 }
 0x1ea   :  { %v341_v49 = vsel %vm339_vm7, %v340_v24, %v338_v45  ;;  %v352_v50 = vsel %vm351_vm8, %v565_v13, %v350_v42  ;;  %v364_v51 = vmul.f32 %v585_v44, %v745_v15  ;;  %v394_v52 = vmul.f32 %v561_v11, %v362_v46 }
 0x1eb   :  { %v355_v53 = vsel %vm353_vm9, %v354_v28, %v352_v50  ;;  %v373_v54 = vsel %vm372_vm10, %v567_v14, %v371_v47  ;;  %v391_v55 = vmul.f32 %v563_v12, %v341_v49  ;;  %v400_v56 = vmul.f32 %v392_v48, %v689_v17 }
 0x1ec   :  { %v587_v57 = vpop.eup %586  ;;  %v366_v58 = vsel %vm365_vm12, %v745_v15, %v364_v51  ;;  %v376_v59 = vsel %vm374_vm11, %v375_v32, %v373_v54  ;;  %v393_v60 = vmul.f32 %v565_v13, %v355_v53  ;;  %v402_v61 = vmul.f32 %v394_v52, %v697_v23 }
 0x1ed   :  { %v589_v62 = vpop.eup %588  ;;  %v369_v63 = vsel %vm367_vm13, %v368_v38, %v366_v58  ;;  %v385_v0 = vmul.f32 %v587_v57, %v748_v16  ;;  %v396_v1 = vmul.f32 %v567_v14, %v376_v59  ;;  %v399_v2 = vmul.f32 %v391_v55, %v691_v19  ;;  %408 = vst [vmem:[#allocation2 + $0x8] sm:$0xff] %v400_v56 }
 0x1ee   :  { %v378_v17 = vmul.f32 %v589_v62, %v750_v18  ;;  %v395_v4 = vmul.f32 %v745_v15, %v369_v63  ;;  %v401_v5 = vmul.f32 %v393_v60, %v699_v26  ;;  %410 = vst [vmem:[#allocation2 + $0x18] sm:$0xff] %v402_v61  ;;  %v382_v23 = vand.u32 2147483648, %v750_v18 }
 0x1ef   :  { %v387_v6 = vsel %vm386_vm14, %v748_v16, %v385_v0  ;;  %v404_v19 = vmul.f32 %v396_v1, %v705_v30  ;;  %407 = vst [vmem:[#allocation2] sm:$0xff] %v399_v2 }
 0x1f0   :  { %v380_v7 = vsel %vm379_vm0, %v750_v18, %v378_v17  ;;  %v390_v8 = vsel %vm388_vm15, %v389_v3, %v387_v6  ;;  %v403_v26 = vmul.f32 %v395_v4, %v707_v33  ;;  %409 = vst [vmem:[#allocation2 + $0x10] sm:$0xff] %v401_v5 }
 0x1f1   :  { %v383_v9 = vsel %vm381_vm1, %v382_v23, %v380_v7  ;;  %v398_v10 = vmul.f32 %v748_v16, %v390_v8  ;;  %412 = vst [vmem:[#allocation2 + $0x28] sm:$0xff] %v404_v19 }
 0x1f2   :  { %v397_v11 = vmul.f32 %v750_v18, %v383_v9  ;;  %411 = vst [vmem:[#allocation2 + $0x20] sm:$0xff] %v403_v26 }
 0x1f3   :  { %v406_v30 = vmul.f32 %v398_v10, %v713_v37 }
 0x1f4   :  { %v405_v12 = vmul.f32 %v397_v11, %v715_v40 }
 0x1f5   :  { %414 = vst [vmem:[#allocation2 + $0x38] sm:$0xff] %v406_v30 }
 0x1f6   :  { %413 = vst [vmem:[#allocation2 + $0x30] sm:$0xff] %v405_v12 }
 0x1f7   :  { %601 = shalt.err (!%p598_p4)
}
 0x1f8   :  { %s602_s26 = scalar_lea.hbm %s813_s3, 1024 }
 0x1f9   :  { %p603_p5 = scmp.ne.s32.totalorder %s813_s3, %s602_s26  ;;  %p606_p6 = scmp.lt.u32.totalorder %s602_s26, %s813_s3 }
 0x1fb   :  { %p608_p7 = pnand %p606_p6, %p603_p5 }
 0x1fd   :  { %611 = shalt.err (!%p608_p7)
}
 0x1fe   :  { %s615_s4 = smov 128   ;;  %s616_s5 = smov 8  }
 0x1ff   :  { %426 = dma.vmem_to_hbm [thread:$0]  %s421_s23, 1024, %s813_s3, [#allocation3], %s615_s4, %s615_s4, %s616_s5  }
 0x200   :  { %612 = dma.done.wait [#allocation3], 1024  }
 0x201   :  { %613 = vsyncadd [#allocation3], 4294966272 }
 0x202   :  { %430 = vsyncpa [#allocation3], 1 }

</bundles_post_ra>
